<compile_context>
chip_gen: v7x
topology: tpu7x:2x2x1
jax: 0.10.0
libtpu: 0.0.40
codegen_flags: <defaults>
</compile_context>

<pallas_src>
import jax
import jax.numpy as jnp
from jax.experimental import pallas as pl
from jax.experimental.pallas import tpu as pltpu

_LANES = 512           # lane-dense last dim (multiple of 128)
_MAX_BLOCK_ROWS = 256  # (2, 256, 512) f32 = 1 MiB per pipeline buffer


def _zleakyrelu_kernel(a_ref, x_ref, o_ref):
    # a_ref : (1,) f32 in SMEM                    (trainable slope `a`)
    # x_ref : (2, BLOCK_ROWS, LANES) f32 in VMEM  ([0] = real plane, [1] = imag plane)
    a = a_ref[0]
    re = x_ref[0]
    im = x_ref[1]
    keep = (re > 0.0) & (im > 0.0)                 # strict >, exactly as in torch
    scale = jnp.where(keep, jnp.float32(1.0), a)   # 1 where kept, a otherwise
    o_ref[0] = re * scale
    o_ref[1] = im * scale


def _zleakyrelu_impl(z: jax.Array, a: jax.Array) -> jax.Array:
    """zLeakyReLU on a complex array `z` with real scalar parameter `a` (shape (1,))."""
    orig_shape = z.shape
    total = z.size

    re = jnp.real(z).astype(jnp.float32).reshape(-1)
    im = jnp.imag(z).astype(jnp.float32).reshape(-1)

    # Row geometry: pad so the slab is (rows, LANES) with rows a multiple of the
    # block height (itself a multiple of 8).  Padding is stripped afterwards.
    rows_raw = -(-total // _LANES)
    rows8 = ((rows_raw + 7) // 8) * 8
    block_rows = min(_MAX_BLOCK_ROWS, rows8)
    rows = ((rows8 + block_rows - 1) // block_rows) * block_rows
    pad = rows * _LANES - total

    re = jnp.pad(re, (0, pad)).reshape(rows, _LANES)
    im = jnp.pad(im, (0, pad)).reshape(rows, _LANES)
    x = jnp.stack([re, im], axis=0)                # (2, rows, LANES)

    grid = (rows // block_rows,)
    out = pl.pallas_call(
        _zleakyrelu_kernel,
        out_shape=jax.ShapeDtypeStruct((2, rows, _LANES), jnp.float32),
        grid=grid,
        in_specs=[
            pl.BlockSpec(memory_space=pltpu.MemorySpace.SMEM),           # a (scalar)
            pl.BlockSpec((2, block_rows, _LANES), lambda i: (0, i, 0)),  # slab
        ],
        out_specs=pl.BlockSpec((2, block_rows, _LANES), lambda i: (0, i, 0)),
        input_output_aliases={1: 0},   # reuse the slab's HBM buffer for the output
        compiler_params=pltpu.CompilerParams(
            dimension_semantics=("parallel",)),
    )(a.astype(jnp.float32).reshape(1), x)

    out_re = out[0].reshape(-1)[:total].reshape(orig_shape)
    out_im = out[1].reshape(-1)[:total].reshape(orig_shape)
    return jax.lax.complex(out_re, out_im).astype(jnp.complex64)


# jit the full wrapper so the split / pad / stack / unpad / recombine passes are
# fused around the pallas_call instead of each making its own HBM round trip.
zleakyrelu = jax.jit(_zleakyrelu_impl)


if __name__ == "__main__":
    key = jax.random.PRNGKey(0)
    k_re, k_im = jax.random.split(key)

    B, C, H, W = 2, 4, 16, 16  # NCHW, matching PyTorch conv conventions
    z = (jax.random.normal(k_re, (B, C, H, W), dtype=jnp.float32)
         + 1j * jax.random.normal(k_im, (B, C, H, W), dtype=jnp.float32)
         ).astype(jnp.complex64)

    # Matches nn.Parameter(torch.Tensor([0.2]))
    a = jnp.array([0.2], dtype=jnp.float32)

    out = zleakyrelu(z, a)
    out = jax.block_until_ready(out)

    # Pure-JAX reference with the same semantics as the torch forward:
    #   z * mask + a * z * ~mask  ==  where(mask, z, a*z)   (a is real)
    keep = (jnp.real(z) > 0) & (jnp.imag(z) > 0)
    ref = jnp.where(keep, z, a[0] * z).astype(jnp.complex64)

    assert out.shape == z.shape and out.dtype == jnp.complex64
    assert jnp.allclose(out, ref, atol=1e-6), "mismatch vs reference"

    print("KERNEL_OK")
</pallas_src>

<mosaic_0001>
module attributes {stable_mosaic.version = 11 : i64} {
  func.func @_zleakyrelu_kernel(%arg0: i32, %arg1: memref<1xf32, #tpu.memory_space<smem>>, %arg2: memref<2x8x512xf32, #tpu.memory_space<vmem>>, %arg3: memref<2x8x512xf32, #tpu.memory_space<vmem>>) attributes {dimension_semantics = [#tpu.dimension_semantics<parallel>], iteration_bounds = array<i64: 1>, scalar_prefetch = 0 : i64, scratch_operands = 0 : i64, tpu.core_type = #tpu.core_type<tc>, window_params = [{transform_indices = @transform_0, window_bounds = array<i64: 1>}, {transform_indices = @transform_1, window_bounds = array<i64: 2, 8, 512>}, {transform_indices = @transform_2, window_bounds = array<i64: 2, 8, 512>}]} {
    %c0 = arith.constant 0 : index
    %0 = memref.load %arg1[%c0] : memref<1xf32, #tpu.memory_space<smem>>
    %c0_0 = arith.constant 0 : index
    %c0_1 = arith.constant 0 : index
    %c0_2 = arith.constant 0 : index
    %1 = vector.load %arg2[%c0_0, %c0_1, %c0_2] : memref<2x8x512xf32, #tpu.memory_space<vmem>>, vector<1x8x512xf32>
    %2 = vector.shape_cast %1 : vector<1x8x512xf32> to vector<8x512xf32>
    %c1 = arith.constant 1 : index
    %c0_3 = arith.constant 0 : index
    %c0_4 = arith.constant 0 : index
    %3 = vector.load %arg2[%c1, %c0_3, %c0_4] : memref<2x8x512xf32, #tpu.memory_space<vmem>>, vector<1x8x512xf32>
    %4 = vector.shape_cast %3 : vector<1x8x512xf32> to vector<8x512xf32>
    %cst = arith.constant 0.000000e+00 : f32
    %5 = vector.broadcast %cst : f32 to vector<8x512xf32>
    %6 = arith.cmpf ogt, %2, %5 : vector<8x512xf32>
    %cst_5 = arith.constant 0.000000e+00 : f32
    %7 = vector.broadcast %cst_5 : f32 to vector<8x512xf32>
    %8 = arith.cmpf ogt, %4, %7 : vector<8x512xf32>
    %9 = arith.andi %6, %8 : vector<8x512xi1>
    %cst_6 = arith.constant 1.000000e+00 : f32
    %10 = vector.broadcast %cst_6 : f32 to vector<8x512xf32>
    %11 = vector.broadcast %0 : f32 to vector<8x512xf32>
    %12 = arith.select %9, %10, %11 : vector<8x512xi1>, vector<8x512xf32>
    %13 = arith.mulf %2, %12 : vector<8x512xf32>
    %c0_7 = arith.constant 0 : index
    %c0_8 = arith.constant 0 : index
    %c0_9 = arith.constant 0 : index
    %14 = vector.load %arg3[%c0_7, %c0_8, %c0_9] : memref<2x8x512xf32, #tpu.memory_space<vmem>>, vector<1x8x512xf32>
    %15 = vector.shape_cast %14 : vector<1x8x512xf32> to vector<8x512xf32>
    %16 = vector.shape_cast %13 : vector<8x512xf32> to vector<1x8x512xf32>
    tpu.vector_store %arg3[%c0_7, %c0_8, %c0_9], %16 {strides = array<i32>} : memref<2x8x512xf32, #tpu.memory_space<vmem>>, vector<1x8x512xf32>,
    %17 = arith.mulf %4, %12 : vector<8x512xf32>
    %c1_10 = arith.constant 1 : index
    %c0_11 = arith.constant 0 : index
    %c0_12 = arith.constant 0 : index
    %18 = vector.load %arg3[%c1_10, %c0_11, %c0_12] : memref<2x8x512xf32, #tpu.memory_space<vmem>>, vector<1x8x512xf32>
    %19 = vector.shape_cast %18 : vector<1x8x512xf32> to vector<8x512xf32>
    %20 = vector.shape_cast %17 : vector<8x512xf32> to vector<1x8x512xf32>
    tpu.vector_store %arg3[%c1_10, %c0_11, %c0_12], %20 {strides = array<i32>} : memref<2x8x512xf32, #tpu.memory_space<vmem>>, vector<1x8x512xf32>,
    return
  }
  func.func @transform_0(%arg0: i32) -> i32 {
    %c0_i32 = arith.constant 0 : i32
    %c0_i32_0 = arith.constant 0 : i32
    return %c0_i32 : i32
  }
  func.func @transform_1(%arg0: i32) -> (i32, i32, i32) {
    %c0_i32 = arith.constant 0 : i32
    %c0_i32_0 = arith.constant 0 : i32
    %c0_i32_1 = arith.constant 0 : i32
    return %c0_i32, %arg0, %c0_i32_0 : i32, i32, i32
  }
  func.func @transform_2(%arg0: i32) -> (i32, i32, i32) {
    %c0_i32 = arith.constant 0 : i32
    %c0_i32_0 = arith.constant 0 : i32
    %c0_i32_1 = arith.constant 0 : i32
    return %c0_i32, %arg0, %c0_i32_0 : i32, i32, i32
  }
}

</mosaic_0001>

<bundles_post_ra>
// kernel: custom-call.1
= control target key start
LH: loop header
LB: loop body
LE: loop exit
PB: predicated region body
PF: predicated region fallthrough
CT: control target
= control target key end

     0   :  { %s59_s0 = inlined_call_operand.hbm [shape: c64[2,4,16,16], index: 0, kind: input, shape index: {}]   ;;  %s60_s1 = inlined_call_operand.vmem [shape: f32[2,4,16,16], index: 1, kind: output, shape index: {}]  }
   0x1   :  { %s2_s8 = scalar_lea.hbm %s59_s0, 2048 }
   0x2   :  { %3 = vsyncpa [#allocation0], 0  ;;  %s4_s11 = sshll.u32 %s60_s1, 4  ;;  %s34_s14 = scalar_lea.hbm %s59_s0, 4096  ;;  %s5_s11 = int_to_ptr.vmem [resolvable:$true] %s4_s11 }
   0x3   :  { %p11_p0 = scmp.ne.s32.totalorder %s2_s8, %s34_s14  ;;  %p13_p1 = scmp.lt.u32.totalorder %s2_s8, %s59_s0 }
   0x4   :  { %p14_p2 = scmp.lt.u32.totalorder %s34_s14, %s34_s14  ;;  %p16_p4 = scmp.lt.u32.totalorder %s34_s14, %s2_s8 }
   0x6   :  { %p15_p3 = por %p14_p2, %p13_p1 }
   0x8   :  { %p17_p5 = por %p16_p4, %p15_p3 }
   0xa   :  { %p18_p6 = pnand %p17_p5, %p11_p0 }
   0xc   :  { %21 = shalt.err (!%p18_p6)  }
   0xd   :  { %s22_s17 = scalar_lea.vmem %s5_s11, 2048  ;;  %p27_p8 = scmp.lt.s32.totalorder %s5_s11, %s5_s11 }
   0xe   :  { %p23_p7 = scmp.ne.s32.totalorder %s5_s11, %s22_s17  ;;  %p28_p9 = scmp.lt.s32.totalorder %s22_s17, %s22_s17 }
  0x10   :  { %p29_p10 = por %p28_p9, %p27_p8 }
  0x12   :  { %p30_p11 = pnand %p29_p10, %p23_p7 }
  0x14   :  { %33 = shalt.err (!%p30_p11)  }
  0x15   :  { %7 = dma.hbm_to_vmem [thread:$0]  %s2_s8, 2048, %s5_s11, [#allocation0] }
  0x16   :  { %35 = dma.done.wait [#allocation0], 2048  }
  0x17   :  { %36 = vsyncadd [#allocation0], 4294965248 }
  0x18   :  { %9 = vsyncpa [#allocation0], 1 }

// kernel: custom-call
= control target key start
LH: loop header
LB: loop body
LE: loop exit
PB: predicated region body
PF: predicated region fallthrough
CT: control target
= control target key end

     0   :  { %2 = vsyncpa [#allocation0], 0  ;;  %s61_s0 = inlined_call_operand.hbm [shape: c64[2,4,16,16], index: 0, kind: input, shape index: {}]   ;;  %s62_s1 = inlined_call_operand.vmem [shape: f32[2,4,16,16], index: 1, kind: output, shape index: {}]  }
   0x1   :  { %s3_s8 = sshll.u32 %s62_s1, 4  ;;  %s9_s11 = scalar_lea.hbm %s61_s0, 2048  ;;  %s4_s8 = int_to_ptr.vmem [resolvable:$true] %s3_s8 }
   0x2   :  { %p10_p0 = scmp.ne.s32.totalorder %s61_s0, %s9_s11  ;;  %s11_s16 = scalar_lea.hbm %s61_s0, 4096 }
   0x3   :  { %p12_p1 = scmp.lt.u32.totalorder %s11_s16, %s9_s11  ;;  %p13_p2 = scmp.lt.u32.totalorder %s9_s11, %s61_s0 }
   0x5   :  { %p14_p3 = por %p13_p2, %p12_p1 }
   0x7   :  { %p15_p4 = pnand %p14_p3, %p10_p0 }
   0x9   :  { %18 = shalt.err (!%p15_p4)  }
   0xa   :  { %s19_s1 = scalar_lea.vmem %s4_s8, 2048  ;;  %p24_p6 = scmp.lt.s32.totalorder %s4_s8, %s4_s8 }
   0xb   :  { %p20_p5 = scmp.ne.s32.totalorder %s4_s8, %s19_s1  ;;  %p25_p7 = scmp.lt.s32.totalorder %s19_s1, %s19_s1 }
   0xd   :  { %p26_p8 = por %p25_p7, %p24_p6 }
   0xf   :  { %p27_p9 = pnand %p26_p8, %p20_p5 }
  0x11   :  { %30 = shalt.err (!%p27_p9)  }
  0x12   :  { %6 = dma.hbm_to_vmem [thread:$0]  %s61_s0, 2048, %s4_s8, [#allocation0] }
  0x13   :  { %31 = dma.done.wait [#allocation0], 2048  }
  0x14   :  { %32 = vsyncadd [#allocation0], 4294965248 }
  0x15   :  { %8 = vsyncpa [#allocation0], 1 }

// kernel: custom-call.2
= control target key start
LH: loop header
LB: loop body
LE: loop exit
PB: predicated region body
PF: predicated region fallthrough
CT: control target
= control target key end

     0   :  { %s126_s0 = inlined_call_operand.vmem [shape: f32[2,4,16,16], index: 0, kind: input, shape index: {}]   ;;  %s127_s1 = inlined_call_operand.vmem [shape: f32[2,4,16,16], index: 1, kind: input, shape index: {}]   ;;  %s128_s2 = inlined_call_operand.hbm [shape: c64[2,4,16,16], index: 2, kind: output, shape index: {}]  }
   0x1   :  { %s87_s11 = scalar_lea.hbm %s128_s2, 2048 }
   0x2   :  { %4 = vsyncpa [#allocation0], 0  ;;  %s5_s14 = sshll.u32 %s126_s0, 4  ;;  %s6_s14 = int_to_ptr.vmem [resolvable:$true] %s5_s14 }
   0x3   :  { %s18_s15 = scalar_lea.vmem %s6_s14, 2048  ;;  %p23_p1 = scmp.lt.s32.totalorder %s6_s14, %s6_s14 }
   0x4   :  { %p19_p0 = scmp.ne.s32.totalorder %s6_s14, %s18_s15  ;;  %p24_p2 = scmp.lt.s32.totalorder %s18_s15, %s18_s15 }
   0x6   :  { %p25_p3 = por %p24_p2, %p23_p1 }
   0x8   :  { %p26_p4 = pnand %p25_p3, %p19_p0 }
   0xa   :  { %29 = shalt.err (!%p26_p4)  }
   0xb   :  { %p31_p5 = scmp.ne.s32.totalorder %s128_s2, %s87_s11  ;;  %s32_s0 = scalar_lea.hbm %s128_s2, 4096 }
   0xc   :  { %p33_p6 = scmp.lt.u32.totalorder %s32_s0, %s87_s11  ;;  %p34_p7 = scmp.lt.u32.totalorder %s87_s11, %s128_s2 }
   0xe   :  { %p35_p8 = por %p34_p7, %p33_p6 }
  0x10   :  { %p36_p9 = pnand %p35_p8, %p31_p5 }
  0x12   :  { %39 = shalt.err (!%p36_p9)  }
  0x13   :  { %8 = dma.vmem_to_hbm [thread:$0]  %s6_s14, 2048, %s128_s2, [#allocation0] }
  0x14   :  { %65 = dma.done.wait [#allocation0], 2048  }
  0x15   :  { %66 = vsyncadd [#allocation0], 4294965248 }
  0x16   :  { %10 = vsyncpa [#allocation0], 1 }
  0x17   :  { %11 = vsyncpa [#allocation1], 0  ;;  %s12_s28 = sshll.u32 %s127_s1, 4  ;;  %s13_s28 = int_to_ptr.vmem [resolvable:$true] %s12_s28 }
  0x18   :  { %s40_s29 = scalar_lea.vmem %s13_s28, 2048  ;;  %p45_p11 = scmp.lt.s32.totalorder %s13_s28, %s13_s28 }
  0x19   :  { %p41_p10 = scmp.ne.s32.totalorder %s13_s28, %s40_s29  ;;  %p46_p12 = scmp.lt.s32.totalorder %s40_s29, %s40_s29 }
  0x1b   :  { %p47_p13 = por %p46_p12, %p45_p11 }
  0x1d   :  { %p48_p0 = pnand %p47_p13, %p41_p10 }
  0x1f   :  { %51 = shalt.err (!%p48_p0)  }
  0x20   :  { %p53_p1 = scmp.ne.s32.totalorder %s87_s11, %s32_s0  ;;  %p56_p2 = scmp.lt.u32.totalorder %s32_s0, %s32_s0 }
  0x22   :  { %p57_p3 = por %p56_p2, %p34_p7 }
  0x24   :  { %p59_p4 = por %p57_p3, %p33_p6 }
  0x26   :  { %p60_p5 = pnand %p59_p4, %p53_p1 }
  0x28   :  { %63 = shalt.err (!%p60_p5)  }
  0x29   :  { %15 = dma.vmem_to_hbm [thread:$0]  %s13_s28, 2048, %s87_s11, [#allocation1] }
  0x2a   :  { %67 = dma.done.wait [#allocation1], 2048  }
  0x2b   :  { %68 = vsyncadd [#allocation1], 4294965248 }
  0x2c   :  { %17 = vsyncpa [#allocation1], 1 }

// kernel: _zleakyrelu_impl.1
= control target key start
LH: loop header
LB: loop body
LE: loop exit
PB: predicated region body
PF: predicated region fallthrough
CT: control target
= control target key end

     0   :  { %s134_s0 = inlined_call_operand.<no memory space> [shape: f32[1], index: 0, kind: input, shape index: {}]   ;;  %s135_s1 = inlined_call_operand.vmem [shape: f32[2,8,512], index: 1, kind: input, shape index: {}, may-alias: {1,2}]   ;;  %s136_s2 = inlined_call_operand.vmem [shape: f32[2,8,512], index: 2, kind: output, shape index: {}, may-alias: {1,2}]  }
   0x1   :  { %v13_v0 = vld [vmem:[%s135_s1] sm:$0xff]  ;;  %v34_v2 = vstv %s134_s0  ;;  %v14_v3 = vld [vmem:[%s135_s1 + $0x8] sm:$0xff]  ;;  %v15_v5 = vld [vmem:[%s135_s1 + $0x10] sm:$0xff] }
   0x2   :  { %v60_v1 = vld [vmem:[%s135_s1 + $0x20] sm:$0xff]  ;;  %vm22_vm0 = vcmp.gt.f32.partialorder %v13_v0, 0.0  ;;  %v61_v4 = vld [vmem:[%s135_s1 + $0x28] sm:$0xff]  ;;  %vm23_vm2 = vcmp.gt.f32.partialorder %v14_v3, 0.0  ;;  %v62_v6 = vld [vmem:[%s135_s1 + $0x30] sm:$0xff]  ;;  %vm24_vm5 = vcmp.gt.f32.partialorder %v15_v5, 0.0 }
   0x3   :  { %vm26_vm1 = vcmp.gt.f32.partialorder %v60_v1, 0.0  ;;  %vm27_vm4 = vcmp.gt.f32.partialorder %v61_v4, 0.0  ;;  %vm28_vm6 = vcmp.gt.f32.partialorder %v62_v6, 0.0  ;;  %v16_v7 = vld [vmem:[%s135_s1 + $0x18] sm:$0xff] }
   0x4   :  { %vm30_vm3 = vmand %vm22_vm0, %vm26_vm1  ;;  %v63_v8 = vld [vmem:[%s135_s1 + $0x38] sm:$0xff]  ;;  %vm25_vm8 = vcmp.gt.f32.partialorder %v16_v7, 0.0 }
   0x5   :  { %v35_v9 = vsel %vm30_vm3, 1.0, %v34_v2  ;;  %vm31_vm7 = vmand %vm23_vm2, %vm27_vm4  ;;  %vm29_vm9 = vcmp.gt.f32.partialorder %v63_v8, 0.0 }
   0x6   :  { %v39_v10 = vmul.f32 %v35_v9, %v13_v0  ;;  %v36_v11 = vsel %vm31_vm7, 1.0, %v34_v2  ;;  %vm32_vm10 = vmand %vm24_vm5, %vm28_vm6  ;;  %v47_v12 = vmul.f32 %v60_v1, %v35_v9 }
   0x7   :  { %v40_v13 = vmul.f32 %v36_v11, %v14_v3  ;;  %v37_v14 = vsel %vm32_vm10, 1.0, %v34_v2  ;;  %vm33_vm11 = vmand %vm25_vm8, %vm29_vm9  ;;  %v48_v15 = vmul.f32 %v61_v4, %v36_v11 }
   0x8   :  { %43 = vst [vmem:[%s136_s2] sm:$0xff] %v39_v10  ;;  %v41_v16 = vmul.f32 %v37_v14, %v15_v5  ;;  %v38_v17 = vsel %vm33_vm11, 1.0, %v34_v2  ;;  %64 = vst [vmem:[%s136_s2 + $0x20] sm:$0xff] %v47_v12  ;;  %v49_v18 = vmul.f32 %v62_v6, %v37_v14 }
   0x9   :  { %44 = vst [vmem:[%s136_s2 + $0x8] sm:$0xff] %v40_v13  ;;  %v42_v19 = vmul.f32 %v38_v17, %v16_v7  ;;  %65 = vst [vmem:[%s136_s2 + $0x28] sm:$0xff] %v48_v15  ;;  %v50_v20 = vmul.f32 %v63_v8, %v38_v17 }
   0xa   :  { %45 = vst [vmem:[%s136_s2 + $0x10] sm:$0xff] %v41_v16  ;;  %66 = vst [vmem:[%s136_s2 + $0x30] sm:$0xff] %v49_v18 }
   0xb   :  { %46 = vst [vmem:[%s136_s2 + $0x18] sm:$0xff] %v42_v19  ;;  %67 = vst [vmem:[%s136_s2 + $0x38] sm:$0xff] %v50_v20 }

</bundles_post_ra>
